<compile_context>
chip_gen: v7x
topology: tpu7x:2x2x1
jax: 0.10.0
libtpu: 0.0.40
codegen_flags: <defaults>
</compile_context>

<pallas_src>
import functools

import jax
import jax.numpy as jnp
from jax import lax
from jax.experimental import pallas as pl
from jax.experimental.pallas import tpu as pltpu
import numpy as np

_NEG_INF = -1e30                     # finite mask value (robust vs. -inf NaNs)
_VMEM_LIMIT = 48 * 1024 * 1024       # conservative for v7x (64 MiB physical)


def _pick_tile(dim: int, target: int) -> int:
    """Largest divisor of `dim` that is <= target (exact tiling, no padding)."""
    t = min(dim, target)
    while dim % t:
        t -= 1
    return t


# ----------------------- tiled linear: y = x @ w^T --------------------------

def _matmul_kernel(x_ref, w_ref, o_ref, acc_ref):
    # x_ref: (tm, tk), w_ref: (tn, tk)  (PyTorch (out, in) weight layout)
    @pl.when(pl.program_id(2) == 0)
    def _init():
        acc_ref[...] = jnp.zeros_like(acc_ref)

    acc_ref[...] += lax.dot_general(
        x_ref[...], w_ref[...],
        (((1,), (1,)), ((), ())),            # contract K on both (x @ w^T)
        preferred_element_type=jnp.float32)

    @pl.when(pl.program_id(2) == pl.num_programs(2) - 1)
    def _done():
        o_ref[...] = acc_ref[...].astype(o_ref.dtype)


def _linear(x2d: jax.Array, w: jax.Array, *,
            tm_target=256, tn_target=256, tk_target=512) -> jax.Array:
    """x2d: (M, K), w: (Nout, K) in nn.Linear layout -> (M, Nout)."""
    M, K = x2d.shape
    Nout, K2 = w.shape
    assert K == K2
    tm = _pick_tile(M, tm_target)
    tn = _pick_tile(Nout, tn_target)
    tk = _pick_tile(K, tk_target)
    grid = (M // tm, Nout // tn, K // tk)
    isz = jnp.dtype(x2d.dtype).itemsize
    cost = pl.CostEstimate(
        flops=2 * M * Nout * K,
        transcendentals=0,
        bytes_accessed=(M * K + K * Nout + M * Nout) * isz,
    )
    return pl.pallas_call(
        _matmul_kernel,
        out_shape=jax.ShapeDtypeStruct((M, Nout), x2d.dtype),
        grid_spec=pltpu.PrefetchScalarGridSpec(
            num_scalar_prefetch=0,
            grid=grid,
            in_specs=[
                pl.BlockSpec((tm, tk), lambda i, j, k: (i, k)),
                pl.BlockSpec((tn, tk), lambda i, j, k: (j, k)),
            ],
            out_specs=pl.BlockSpec((tm, tn), lambda i, j, k: (i, j)),
            scratch_shapes=[pltpu.VMEM((tm, tn), jnp.float32)],
        ),
        compiler_params=pltpu.CompilerParams(
            dimension_semantics=("parallel", "parallel", "arbitrary"),
            vmem_limit_bytes=_VMEM_LIMIT,
        ),
        cost_estimate=cost,
    )(x2d, w)


# ------------------------ flash attention (online softmax) ------------------

def _flash_kernel(q_ref, k_ref, v_ref, o_ref, m_sc, l_sc, acc_sc, *,
                  sm_scale, causal, tq, tk):
    qi = pl.program_id(1)
    ki = pl.program_id(2)

    @pl.when(ki == 0)
    def _init():
        m_sc[...] = jnp.full_like(m_sc, _NEG_INF)
        l_sc[...] = jnp.zeros_like(l_sc)
        acc_sc[...] = jnp.zeros_like(acc_sc)

    def _compute():
        q = q_ref[0]                           # (tq, d)  input dtype (bf16 OK)
        k = k_ref[0]                           # (tk, d)
        v = v_ref[0]                           # (tk, d)
        s = lax.dot_general(
            q, k, (((1,), (1,)), ((), ())),    # q @ k^T
            preferred_element_type=jnp.float32) * sm_scale        # (tq, tk) f32
        if causal:
            rows = qi * tq + lax.broadcasted_iota(jnp.int32, (tq, tk), 0)
            cols = ki * tk + lax.broadcasted_iota(jnp.int32, (tq, tk), 1)
            s = jnp.where(cols <= rows, s, _NEG_INF)
        m_prev = m_sc[...]                                          # (tq, 1)
        m_new = jnp.maximum(m_prev, jnp.max(s, axis=-1, keepdims=True))
        p = jnp.exp(s - m_new)                                      # (tq, tk)
        alpha = jnp.exp(m_prev - m_new)                             # (tq, 1)
        l_sc[...] = alpha * l_sc[...] + jnp.sum(p, axis=-1, keepdims=True)
        acc_sc[...] = alpha * acc_sc[...] + jnp.dot(
            p.astype(v.dtype), v, preferred_element_type=jnp.float32)
        m_sc[...] = m_new

    if causal:
        # Skip KV tiles lying entirely above the causal diagonal.
        pl.when(ki * tk < (qi + 1) * tq)(_compute)
    else:
        _compute()

    @pl.when(ki == pl.num_programs(2) - 1)
    def _done():
        inv_l = pl.reciprocal(l_sc[...], approx=True)   # EUP slot, frees VALU
        o_ref[0] = (acc_sc[...] * inv_l).astype(o_ref.dtype)


def _attention(q, k, v, sm_scale, causal, *, tile_target=128):
    """q,k,v: (B*H, N, d) -> (B*H, N, d). Flash-tiled over q and kv."""
    BH, N, d = q.shape
    t = _pick_tile(N, tile_target)
    nq = N // t
    nk = N // t
    kernel = functools.partial(
        _flash_kernel, sm_scale=sm_scale, causal=causal, tq=t, tk=t)
    isz = jnp.dtype(q.dtype).itemsize
    flops = 4 * BH * N * N * d
    transc = BH * N * N
    if causal:
        flops //= 2
        transc //= 2
    cost = pl.CostEstimate(
        flops=flops,
        transcendentals=transc,
        bytes_accessed=(BH * N * d * (1 + 2 * nq) + BH * N * d) * isz,
    )
    q_spec = pl.BlockSpec((1, t, d), lambda bh, qi, ki: (bh, qi, 0))
    kv_spec = pl.BlockSpec((1, t, d), lambda bh, qi, ki: (bh, ki, 0))
    return pl.pallas_call(
        kernel,
        out_shape=jax.ShapeDtypeStruct((BH, N, d), q.dtype),
        grid_spec=pltpu.PrefetchScalarGridSpec(
            num_scalar_prefetch=0,
            grid=(BH, nq, nk),
            in_specs=[q_spec, kv_spec, kv_spec],
            out_specs=pl.BlockSpec((1, t, d), lambda bh, qi, ki: (bh, qi, 0)),
            scratch_shapes=[
                pltpu.VMEM((t, 1), jnp.float32),   # running max m
                pltpu.VMEM((t, 1), jnp.float32),   # running sum l
                pltpu.VMEM((t, d), jnp.float32),   # f32 accumulator
            ],
        ),
        compiler_params=pltpu.CompilerParams(
            dimension_semantics=("parallel", "parallel", "arbitrary"),
            vmem_limit_bytes=_VMEM_LIMIT,
        ),
        cost_estimate=cost,
    )(q, k, v)


# ------------------------------ forward glue --------------------------------

def attention_forward(x, w_qkv, w_o, *, n_heads, dim_per_head, causal):
    """Replicates Attention.forward with attn_type=FLASH, n_ranks=1.

    x:      (B, N, D)
    w_qkv:  (3*D, D)   (nn.Linear weight layout: (out, in))
    w_o:    (D, D)
    """
    B, N, D = x.shape
    sm_scale = float(dim_per_head) ** -0.5

    # qkv projection (tiled Pallas matmul, weight kept in (out, in) layout)
    qkv = _linear(x.reshape(B * N, D), w_qkv)                # (B*N, 3D)
    qkv = qkv.reshape(B, N, 3, n_heads, dim_per_head)
    q, k, v = qkv[:, :, 0], qkv[:, :, 1], qkv[:, :, 2]       # (B, N, H, d)

    # TODO(synk): fold this head split / transpose into the attention
    # BlockSpec index_maps (read q/k/v straight from the (B,N,3D) slab and
    # write a lane-dense (B,N,H*d) output) once head_dim is a multiple of 128;
    # at d_head=8 such blocks violate the (8,128) last-two-dims alignment.
    def bh(t):
        return t.transpose(0, 2, 1, 3).reshape(B * n_heads, N, dim_per_head)

    o = _attention(bh(q), bh(k), bh(v), sm_scale, causal)    # (B*H, N, d)
    o = o.reshape(B, n_heads, N, dim_per_head).transpose(0, 2, 1, 3)
    o = o.reshape(B, N, D)                                   # 'b n h d -> b n (h d)'

    # output projection (tiled Pallas matmul)
    out = _linear(o.reshape(B * N, D), w_o).reshape(B, N, D)
    return out


def _reference_forward(x, w_qkv, w_o, *, n_heads, dim_per_head, causal):
    """Pure-jnp reference for correctness check."""
    B, N, D = x.shape
    sm_scale = float(dim_per_head) ** -0.5
    qkv = x @ w_qkv.T
    qkv = qkv.reshape(B, N, 3, n_heads, dim_per_head)
    q, k, v = qkv[:, :, 0], qkv[:, :, 1], qkv[:, :, 2]       # (B, N, H, d)
    s = jnp.einsum("bnhd,bmhd->bhnm", q, k) * sm_scale
    if causal:
        mask = jnp.tril(jnp.ones((N, N), bool))
        s = jnp.where(mask[None, None], s, -jnp.inf)
    p = jax.nn.softmax(s, axis=-1)
    o = jnp.einsum("bhnm,bmhd->bnhd", p, v).reshape(B, N, D)
    return o @ w_o.T


# ---------------------------------- main -------------------------------------

if __name__ == "__main__":
    # Module config (small, consistent with the PyTorch module):
    dim = 32
    dim_per_head = 8
    n_heads = dim // dim_per_head
    seq_len = 8
    batch = 2
    causal = True
    # rank=0, n_ranks=1, dropout=0.0, attn_type=FLASH  (shard/unshard = identity)

    key = jax.random.PRNGKey(0)
    k_x, k_qkv, k_o = jax.random.split(key, 3)

    x = jax.random.normal(k_x, (batch, seq_len, dim), dtype=jnp.float32)
    # nn.Linear weight shapes: (out_features, in_features)
    w_qkv = jax.random.normal(k_qkv, (3 * dim, dim), dtype=jnp.float32) * (dim ** -0.5)
    w_o = jax.random.normal(k_o, (dim, dim), dtype=jnp.float32) * (dim ** -0.5)

    out = attention_forward(
        x, w_qkv, w_o, n_heads=n_heads, dim_per_head=dim_per_head, causal=causal
    )
    out = jax.block_until_ready(out)

    ref = _reference_forward(
        x, w_qkv, w_o, n_heads=n_heads, dim_per_head=dim_per_head, causal=causal
    )
    # Tolerance accommodates the approx (EUP) reciprocal in the flash epilogue.
    np.testing.assert_allclose(np.asarray(out), np.asarray(ref), rtol=1e-2, atol=1e-2)

    print("KERNEL_OK")
</pallas_src>

<mosaic_0001>
module attributes {stable_mosaic.version = 11 : i64} {
  func.func @_matmul_kernel(%arg0: i32, %arg1: i32, %arg2: i32, %arg3: memref<16x32xf32, #tpu.memory_space<vmem>>, %arg4: memref<96x32xf32, #tpu.memory_space<vmem>>, %arg5: memref<16x96xf32, #tpu.memory_space<vmem>>, %arg6: memref<16x96xf32, #tpu.memory_space<vmem>>) attributes {dimension_semantics = [#tpu.dimension_semantics<parallel>, #tpu.dimension_semantics<parallel>, #tpu.dimension_semantics<arbitrary>], iteration_bounds = array<i64: 1, 1, 1>, scalar_prefetch = 0 : i64, scratch_operands = 1 : i64, tpu.core_type = #tpu.core_type<tc>, window_params = [{transform_indices = @transform_0, window_bounds = array<i64: 16, 32>}, {transform_indices = @transform_1, window_bounds = array<i64: 96, 32>}, {transform_indices = @transform_2, window_bounds = array<i64: 16, 96>}]} {
    %c0_i32 = arith.constant 0 : i32
    %0 = arith.cmpi eq, %arg2, %c0_i32 : i32
    %1 = arith.extui %0 : i1 to i32
    %c0_i32_0 = arith.constant 0 : i32
    %2 = arith.cmpi ne, %1, %c0_i32_0 : i32
    scf.if %2 {
      %cst_10 = arith.constant 0.000000e+00 : f32
      %12 = vector.broadcast %cst_10 : f32 to vector<16x96xf32>
      %c0_11 = arith.constant 0 : index
      %c0_12 = arith.constant 0 : index
      %13 = vector.load %arg6[%c0_11, %c0_12] : memref<16x96xf32, #tpu.memory_space<vmem>>, vector<16x96xf32>
      tpu.vector_store %arg6[%c0_11, %c0_12], %12 {strides = array<i32>} : memref<16x96xf32, #tpu.memory_space<vmem>>, vector<16x96xf32>,
    } else {
    }
    %c0 = arith.constant 0 : index
    %c0_1 = arith.constant 0 : index
    %3 = vector.load %arg6[%c0, %c0_1] : memref<16x96xf32, #tpu.memory_space<vmem>>, vector<16x96xf32>
    %c0_2 = arith.constant 0 : index
    %c0_3 = arith.constant 0 : index
    %4 = vector.load %arg3[%c0_2, %c0_3] : memref<16x32xf32, #tpu.memory_space<vmem>>, vector<16x32xf32>
    %c0_4 = arith.constant 0 : index
    %c0_5 = arith.constant 0 : index
    %5 = vector.load %arg4[%c0_4, %c0_5] : memref<96x32xf32, #tpu.memory_space<vmem>>, vector<96x32xf32>
    %cst = arith.constant dense<0.000000e+00> : vector<16x96xf32>
    %6 = tpu.matmul %4, %5, %cst {dimension_numbers = #tpu.dot_dimension_numbers<[1], [1], [0], [0], [0, 0, 1, 0], [], []>} : vector<16x32xf32>, vector<96x32xf32>, vector<16x96xf32> -> vector<16x96xf32>
    %7 = arith.addf %3, %6 : vector<16x96xf32>
    %c0_6 = arith.constant 0 : index
    %c0_7 = arith.constant 0 : index
    %8 = vector.load %arg6[%c0_6, %c0_7] : memref<16x96xf32, #tpu.memory_space<vmem>>, vector<16x96xf32>
    tpu.vector_store %arg6[%c0_6, %c0_7], %7 {strides = array<i32>} : memref<16x96xf32, #tpu.memory_space<vmem>>, vector<16x96xf32>,
    %c0_i32_8 = arith.constant 0 : i32
    %9 = arith.cmpi eq, %arg2, %c0_i32_8 : i32
    %10 = arith.extui %9 : i1 to i32
    %c0_i32_9 = arith.constant 0 : i32
    %11 = arith.cmpi ne, %10, %c0_i32_9 : i32
    scf.if %11 {
      %c0_10 = arith.constant 0 : index
      %c0_11 = arith.constant 0 : index
      %12 = vector.load %arg6[%c0_10, %c0_11] : memref<16x96xf32, #tpu.memory_space<vmem>>, vector<16x96xf32>
      %c0_12 = arith.constant 0 : index
      %c0_13 = arith.constant 0 : index
      %13 = vector.load %arg5[%c0_12, %c0_13] : memref<16x96xf32, #tpu.memory_space<vmem>>, vector<16x96xf32>
      tpu.vector_store %arg5[%c0_12, %c0_13], %12 {strides = array<i32>} : memref<16x96xf32, #tpu.memory_space<vmem>>, vector<16x96xf32>,
    } else {
    }
    return
  }
  func.func @transform_0(%arg0: i32, %arg1: i32, %arg2: i32) -> (i32, i32) {
    %c0_i32 = arith.constant 0 : i32
    return %arg0, %arg2 : i32, i32
  }
  func.func @transform_1(%arg0: i32, %arg1: i32, %arg2: i32) -> (i32, i32) {
    %c0_i32 = arith.constant 0 : i32
    return %arg1, %arg2 : i32, i32
  }
  func.func @transform_2(%arg0: i32, %arg1: i32, %arg2: i32) -> (i32, i32) {
    %c0_i32 = arith.constant 0 : i32
    return %arg0, %arg1 : i32, i32
  }
}

</mosaic_0001>

<bundles_post_ra>
// kernel: tpu_custom_call.1
= control target key start
LH: loop header
LB: loop body
LE: loop exit
PB: predicated region body
PF: predicated region fallthrough
CT: control target
= control target key end

     0   :  { %vm35_vm0 = vcmask 261120   ;;  %vm16_vm1 = vcmask 785408   ;;  %v300_v6 = vmov 0.0   ;;  %s411_s0 = inlined_call_operand.vmem [shape: f32[16,32], index: 0, kind: input, shape index: {}]   ;;  %s412_s1 = inlined_call_operand.vmem [shape: f32[96,32], index: 1, kind: input, shape index: {}]   ;;  %s413_s2 = inlined_call_operand.hbm [shape: f32[16,96], index: 2, kind: output, shape index: {}]  }
   0x1   :  { %v23_v0 = vld [vmem:[%s412_s1] sm:$0xff]  ;;  %v24_v1 = vld [vmem:[%s412_s1 + $0x8] sm:$0xff]  ;;  %v25_v2 = vld [vmem:[%s412_s1 + $0x10] sm:$0xff]  ;;  %18 = vst.msk [vmem:[#allocation2 + $0x8] sm:$0xff] %vm16_vm1, %v300_v6 }
   0x2   :  { %v236_v3 = vpack.c.bf16 %v24_v1, %v23_v0  ;;  %vm330_vm2 = vmpackc.low %vm35_vm0, %vm35_vm0  ;;  %v26_v5 = vld [vmem:[%s412_s1 + $0x18] sm:$0xff]  ;;  %17 = vst.msk [vmem:[#allocation2] sm:$0xff] %vm16_vm1, %v300_v6  ;;  %v21_v8 = vld [vmem:[%s411_s0] sm:$0xff] }
   0x3   :  { %v242_v7 = vpack.c.bf16 %v26_v5, %v25_v2  ;;  %233 = vmatprep.mubr.msk.f32.mxu0 %vm35_vm0, %v21_v8 }
   0x4   :  { %238 = vmatprep.subr.msk.bf16.mxu0 %vm330_vm2, %v236_v3 }
   0x5   :  { %241 = vmatpush3.bf16.xpose.msk.msra.mxu0 %vm330_vm2, %v236_v3 }
   0x6   :  { %244 = vmatprep.subr.msk.bf16.mxu0 %vm330_vm2, %v242_v7 }
   0x7   :  { %7 = vsyncpa [#allocation4], 0  ;;  %v27_v9 = vld [vmem:[%s412_s1 + $0x20] sm:$0xff]  ;;  %v28_v10 = vld [vmem:[%s412_s1 + $0x28] sm:$0xff] }
   0x8   :  { %v248_v11 = vpack.c.bf16 %v28_v10, %v27_v9  ;;  %v29_v12 = vld [vmem:[%s412_s1 + $0x30] sm:$0xff]  ;;  %v30_v13 = vld [vmem:[%s412_s1 + $0x38] sm:$0xff]  ;;  %v31_v15 = vld [vmem:[%s412_s1 + $0x40] sm:$0xff] }
   0x9   :  { %v254_v14 = vpack.c.bf16 %v30_v13, %v29_v12  ;;  %v32_v16 = vld [vmem:[%s412_s1 + $0x48] sm:$0xff]  ;;  %v33_v18 = vld [vmem:[%s412_s1 + $0x50] sm:$0xff]  ;;  %v34_v19 = vld [vmem:[%s412_s1 + $0x58] sm:$0xff]  ;;  %s301_s1 = smov [#allocation3]  }
   0xa   :  { %v260_v17 = vpack.c.bf16 %v32_v16, %v31_v15  ;;  %v266_v20 = vpack.c.bf16 %v34_v19, %v33_v18  ;;  %v22_v21 = vld [vmem:[%s411_s0 + $0x8] sm:$0xff]  ;;  %v19_v23 = vld [vmem:[#allocation2] sm:$0xff]  ;;  %s170_s9 = sshll.u32 %s301_s1, 4  ;;  %s171_s9 = int_to_ptr.vmem [resolvable:$true] %s170_s9 }
   0xb   :  { %v20_v22 = vld [vmem:[#allocation2 + $0x8] sm:$0xff]  ;;  %s276_s0 = scalar_lea.vmem %s171_s9, 256  ;;  %p281_p1 = scmp.lt.s32.totalorder %s171_s9, %s171_s9 }
   0xc   :  { %p277_p0 = scmp.ne.s32.totalorder %s171_s9, %s276_s0  ;;  %p282_p2 = scmp.lt.s32.totalorder %s276_s0, %s276_s0 }
   0xd   :  { %247 = vmatpush3.bf16.xpose.msk.msra.mxu0 %vm330_vm2, %v242_v7 }
   0xe   :  { %250 = vmatprep.subr.msk.bf16.mxu0 %vm330_vm2, %v248_v11  ;;  %p283_p3 = por %p282_p2, %p281_p1 }
  0x10   :  { %p284_p4 = pnand %p283_p3, %p277_p0 }
  0x15   :  { %253 = vmatpush3.bf16.xpose.msk.msra.mxu0 %vm330_vm2, %v248_v11 }
  0x16   :  { %256 = vmatprep.subr.msk.bf16.mxu0 %vm330_vm2, %v254_v14 }
  0x1d   :  { %259 = vmatpush3.bf16.xpose.msk.msra.mxu0 %vm330_vm2, %v254_v14 }
  0x1e   :  { %262 = vmatprep.subr.msk.bf16.mxu0 %vm330_vm2, %v260_v17 }
  0x25   :  { %265 = vmatpush3.bf16.xpose.msk.msra.mxu0 %vm330_vm2, %v260_v17 }
  0x26   :  { %268 = vmatprep.subr.msk.bf16.mxu0 %vm330_vm2, %v266_v20 }
  0x2d   :  { %271 = vmatpush3.bf16.xpose.msk.msra.mxu0 %vm330_vm2, %v266_v20 }
  0x34   :  { %234 = vmatmul.mubr.msk.f32.vlgmr.msra.gmra.mrb[0].mxu0 %vm35_vm0, %v22_v21 }
 0x107   :  { %v235_v24 = vpop.f32.mrb[0].mxu0 }
 0x108   :  { %v154_v25 = vadd.f32 %v235_v24, %v20_v22  ;;  %v144_v26 = vpop.f32.mrb[1].mxu0 }
 0x109   :  { %v153_v27 = vadd.f32 %v144_v26, %v19_v23 }
 0x10a   :  { %157 = vst.msk [vmem:[#allocation2 + $0x8] sm:$0xff] %vm16_vm1, %v154_v25 }
 0x10b   :  { %156 = vst.msk [vmem:[#allocation2] sm:$0xff] %vm16_vm1, %v153_v27 }
 0x111   :  { %v162_v28 = vld [vmem:[#allocation2 + $0x8] sm:$0xff] }
 0x112   :  { %v161_v29 = vld [vmem:[#allocation2] sm:$0xff]  ;;  %164 = vst.msk [vmem:[#allocation3 + $0x8] sm:$0xff] %vm16_vm1, %v162_v28 }
 0x113   :  { %163 = vst.msk [vmem:[#allocation3] sm:$0xff] %vm16_vm1, %v161_v29 }
 0x114   :  { %287 = shalt.err (!%p284_p4)
}
 0x115   :  { %s288_s12 = scalar_lea.hbm %s413_s2, 256 }
 0x116   :  { %p289_p5 = scmp.ne.s32.totalorder %s413_s2, %s288_s12  ;;  %p292_p6 = scmp.lt.u32.totalorder %s288_s12, %s413_s2 }
 0x118   :  { %p294_p7 = pnand %p292_p6, %p289_p5 }
 0x11a   :  { %297 = shalt.err (!%p294_p7)
}
 0x11b   :  { %s302_s17 = smov 128   ;;  %s303_s18 = smov 8  }
 0x11c   :  { %176 = dma.vmem_to_hbm [thread:$0]  %s171_s9, 256, %s413_s2, [#allocation4], %s302_s17, %s302_s17, %s303_s18  }
 0x11d   :  { %298 = dma.done.wait [#allocation4], 256  }
 0x11e   :  { %299 = vsyncadd [#allocation4], 4294967040 }
 0x11f   :  { %180 = vsyncpa [#allocation4], 1 }

</bundles_post_ra>
